<compile_context>
chip_gen: v7x
topology: tpu7x:2x2x1
jax: 0.10.0
libtpu: 0.0.40
codegen_flags: <defaults>
</compile_context>

<pallas_src>
import numpy as np
import jax
import jax.numpy as jnp
from jax import lax
from jax.experimental import pallas as pl
from jax.experimental.pallas import tpu as pltpu

# ---------------------------------------------------------------------------
# Model configuration (mirrors TCN.__init__ arguments)
# ---------------------------------------------------------------------------
INPUT_SIZE   = 4          # input_size
OUTPUT_SIZE  = 3          # output_size
NUM_CHANNELS = (8, 8)     # num_channels
KERNEL_SIZE  = 3          # kernel_size
DROPOUT      = 0.2        # dropout (identity at inference time)
BATCH        = 2
SEQ_LEN      = 16

LANES   = 128             # lane width of parameter slabs / kernel output
W_ALIGN = 16              # bf16 weight-slab row alignment (native (16,128) bf16 tile)


def block_configs():
    """Static per-TemporalBlock config: (c_in, c_out, dilation, has_downsample)."""
    cfgs = []
    for i, c_out in enumerate(NUM_CHANNELS):
        c_in = INPUT_SIZE if i == 0 else NUM_CHANNELS[i - 1]
        cfgs.append((c_in, c_out, 2 ** i, c_in != c_out))
    return tuple(cfgs)


def init_params(key):
    """Deterministic synthetic parameters (weight_norm folded into the weight).

    Conv1d weights stored as (K, C_in, C_out); Linear weight as (C_last, out);
    biases as (1, C).  Same layout the pure-JAX reference consumes.
    """
    params = []
    for (c_in, c_out, _dil, has_down) in block_configs():
        shapes = [(KERNEL_SIZE, c_in, c_out), (1, c_out),
                  (KERNEL_SIZE, c_out, c_out), (1, c_out)]
        if has_down:
            shapes += [(c_in, c_out), (1, c_out)]          # 1x1 downsample conv
        for shape in shapes:
            key, sub = jax.random.split(key)
            params.append(0.1 * jax.random.normal(sub, shape, jnp.float32))
    c_last = NUM_CHANNELS[-1]
    for shape in [(c_last, OUTPUT_SIZE), (1, OUTPUT_SIZE)]:  # nn.Linear
        key, sub = jax.random.split(key)
        params.append(0.1 * jax.random.normal(sub, shape, jnp.float32))
    return params


# ---------------------------------------------------------------------------
# Host-side parameter packing: one bf16 weight slab + one f32 bias slab
# ---------------------------------------------------------------------------
def pack_params(params):
    cfgs = block_configs()
    mats, biases, blocks_meta = [], [], []
    i = 0
    for (c_in, c_out, dil, has_down) in cfgs:
        w1, b1, w2, b2 = params[i:i + 4]; i += 4
        w1m = np.asarray(w1, np.float32).reshape(KERNEL_SIZE * c_in, c_out)  # im2col layout
        b1v = np.asarray(b1, np.float32).reshape(-1)
        if has_down:
            wd, bd = params[i:i + 2]; i += 2
            # Fuse the 1x1 downsample into conv1's matmul: tap k=K-1 has causal
            # offset 0, i.e. its im2col rows hold h itself, so wd goes into those
            # rows at output lanes [c_out, 2*c_out) (zeros elsewhere).
            fused = np.zeros((KERNEL_SIZE * c_in, 2 * c_out), np.float32)
            fused[:, :c_out] = w1m
            fused[(KERNEL_SIZE - 1) * c_in:, c_out:] = np.asarray(wd, np.float32)
            w1m = fused
            b1v = np.concatenate([b1v, np.asarray(bd, np.float32).reshape(-1)])
        meta = dict(c_in=c_in, c_out=c_out, dil=dil, has_down=has_down,
                    w1=len(mats), b1=len(biases))
        mats.append(w1m); biases.append(b1v)
        meta["w2"] = len(mats); meta["b2"] = len(biases)
        mats.append(np.asarray(w2, np.float32).reshape(KERNEL_SIZE * c_out, c_out))
        biases.append(np.asarray(b2, np.float32).reshape(-1))
        blocks_meta.append(meta)
    wl, bl = params[i:i + 2]
    lin_meta = dict(w=len(mats), b=len(biases), c_in=NUM_CHANNELS[-1])
    mats.append(np.asarray(wl, np.float32))                # (c_last, OUTPUT_SIZE)
    biases.append(np.asarray(bl, np.float32).reshape(-1))

    # 16-row-aligned offsets inside a single (rows, 128) bf16 weight slab
    # (every packed weight load starts at a bf16-tile-aligned sublane).
    offsets, total = [], 0
    for m in mats:
        offsets.append(total)
        total += -(-m.shape[0] // W_ALIGN) * W_ALIGN
    w_slab = np.zeros((total, LANES), np.float32)
    for off, m in zip(offsets, mats):
        w_slab[off:off + m.shape[0], :m.shape[1]] = m

    nb = -(-len(biases) // 8) * 8
    b_slab = np.zeros((nb, LANES), np.float32)
    for r, b in enumerate(biases):
        b_slab[r, :b.shape[0]] = b

    # Swap list indices for slab row offsets (bias index == slab row already).
    for meta in blocks_meta:
        meta["w1"] = offsets[meta["w1"]]
        meta["w2"] = offsets[meta["w2"]]
    lin_meta["w"] = offsets[lin_meta["w"]]

    return (jnp.asarray(w_slab, dtype=jnp.bfloat16),
            jnp.asarray(b_slab, dtype=jnp.float32),
            blocks_meta, lin_meta)


# ---------------------------------------------------------------------------
# Pallas kernel
# ---------------------------------------------------------------------------
def make_tcn_kernel(blocks, lin, B, L, K):
    def kernel(x_ref, w_ref, b_ref, out_ref, col):
        # col: (B*L, K*c_max) f32 im2col scratch shared by all convs.  Batch is
        # folded: rows [b*L, (b+1)*L) hold sequence b, so every matmul has M=B*L.

        def conv(h, c_in, n_out_lanes, dilation, w_off, b_row):
            """Causal dilated conv as ONE (B*L, K*c_in) @ (K*c_in, n_out_lanes) matmul."""
            max_off = (K - 1) * dilation
            for b in range(B):
                base = b * L
                # Causal zero padding: rows [base, base+off_k) of tap k must be 0.
                col[base:base + max_off, :K * c_in] = jnp.zeros(
                    (max_off, K * c_in), jnp.float32)
                for k in range(K):
                    off = (K - 1 - k) * dilation           # static causal tap offset
                    # col[base + t, k*c_in + c] = h[base + t - off, c]   (0 for t < off)
                    col[base + off:base + L, k * c_in:(k + 1) * c_in] = (
                        h[base:base + L - off, :])
            xcol = col[:, :K * c_in].astype(jnp.bfloat16)  # single contiguous read
            w = w_ref[w_off:w_off + K * c_in, :n_out_lanes]
            y = jnp.dot(xcol, w, preferred_element_type=jnp.float32)  # one MXU matmul
            return y + b_ref[b_row:b_row + 1, :n_out_lanes]

        h = x_ref[...]                                     # (B*L, input_size) f32
        for blk in blocks:
            c_in, c_out, dil = blk["c_in"], blk["c_out"], blk["dil"]
            if blk["has_down"]:
                # conv1 and the 1x1 downsample share one matmul (extra output lanes).
                y = conv(h, c_in, 2 * c_out, dil, blk["w1"], blk["b1"])
                out = jnp.maximum(y[:, :c_out], 0.0)       # conv1 + chomp + relu
                res = y[:, c_out:2 * c_out]                # residual projection
            else:
                out = jnp.maximum(
                    conv(h, c_in, c_out, dil, blk["w1"], blk["b1"]), 0.0)
                res = h
            # dropout1 / dropout2: identity at inference
            out = jnp.maximum(
                conv(out, c_out, c_out, dil, blk["w2"], blk["b2"]), 0.0)
            h = jnp.maximum(out + res, 0.0)                # residual add + final ReLU

        # nn.Linear with its weight zero-padded to 128 output lanes -> the final
        # matmul, sigmoid and store are lane-dense; wrapper slices [:OUTPUT_SIZE].
        wl = w_ref[lin["w"]:lin["w"] + lin["c_in"], :]     # (c_last, 128)
        logits = (jnp.dot(h.astype(jnp.bfloat16), wl,
                          preferred_element_type=jnp.float32)
                  + b_ref[lin["b"]:lin["b"] + 1, :])
        # TODO(synk): PyTorch applies .double() before Sigmoid; f64 is unsupported on
        # TPU, so sigmoid runs in f32 here and the f64 cast happens in the host wrapper.
        out_ref[...] = 0.5 * (jnp.tanh(0.5 * logits) + 1.0)   # exact sigmoid, 1 EUP op

    return kernel


def tcn_forward(x, w_slab, b_slab, blocks_meta, lin_meta):
    B, L, _ = x.shape
    c_max = max(max(m["c_in"], m["c_out"]) for m in blocks_meta)
    kernel = make_tcn_kernel(blocks_meta, lin_meta, B, L, KERNEL_SIZE)
    x2 = x.reshape(B * L, INPUT_SIZE)            # fold batch: one DMA, matmul M = B*L
    out = pl.pallas_call(
        kernel,
        out_shape=jax.ShapeDtypeStruct((B * L, LANES), jnp.float32),
        grid_spec=pltpu.PrefetchScalarGridSpec(
            num_scalar_prefetch=0,
            grid=(1,),                            # single step: whole batch at once
            in_specs=[
                pl.BlockSpec((B * L, INPUT_SIZE), lambda i: (0, 0)),
                pl.BlockSpec(w_slab.shape, lambda i: (0, 0)),
                pl.BlockSpec(b_slab.shape, lambda i: (0, 0)),
            ],
            out_specs=pl.BlockSpec((B * L, LANES), lambda i: (0, 0)),
            scratch_shapes=[
                pltpu.VMEM((B * L, KERNEL_SIZE * c_max), jnp.float32),  # merged im2col
            ],
        ),
        compiler_params=pltpu.CompilerParams(dimension_semantics=("arbitrary",)),
    )(x2, w_slab, b_slab)
    return out.reshape(B, L, LANES)[..., :OUTPUT_SIZE]


# ---------------------------------------------------------------------------
# Pure-JAX reference (sanity check only)
# ---------------------------------------------------------------------------
def ref_forward(x, params):
    cfgs = block_configs()
    i = 0
    h = x

    def conv(z, w, b, dilation):
        pad = (KERNEL_SIZE - 1) * dilation
        y = lax.conv_general_dilated(
            z, w, window_strides=(1,), padding=[(pad, 0)],
            rhs_dilation=(dilation,),
            dimension_numbers=("NWC", "WIO", "NWC"),
            precision=lax.Precision.HIGHEST)
        return y + b.reshape(1, 1, -1)

    for (c_in, c_out, dilation, has_down) in cfgs:
        w1, b1, w2, b2 = params[i:i + 4]
        i += 4
        out = jax.nn.relu(conv(h, w1, b1, dilation))
        out = jax.nn.relu(conv(out, w2, b2, dilation))
        if has_down:
            wd, bd = params[i:i + 2]
            i += 2
            res = jnp.einsum("blc,cd->bld", h, wd,
                             precision=lax.Precision.HIGHEST) + bd.reshape(1, 1, -1)
        else:
            res = h
        h = jax.nn.relu(out + res)
    wl, bl = params[i:i + 2]
    logits = jnp.einsum("blc,cd->bld", h, wl,
                        precision=lax.Precision.HIGHEST) + bl.reshape(1, 1, -1)
    return jax.nn.sigmoid(logits)


if __name__ == "__main__":
    key = jax.random.PRNGKey(0)
    key, xkey, pkey = jax.random.split(key, 3)
    x = jax.random.normal(xkey, (BATCH, SEQ_LEN, INPUT_SIZE), jnp.float32)
    params = init_params(pkey)
    w_slab, b_slab, blocks_meta, lin_meta = pack_params(params)

    probs = jax.block_until_ready(tcn_forward(x, w_slab, b_slab, blocks_meta, lin_meta))

    # .double(): final cast to float64 done on host (TPU has no native f64).
    probs64 = np.asarray(probs).astype(np.float64)

    # Sanity check vs. XLA reference (loose tol: kernel matmuls use bf16 inputs — an
    # intentional precision choice; sigmoid itself is exact).
    ref = np.asarray(jax.block_until_ready(ref_forward(x, params)))
    assert probs64.shape == (BATCH, SEQ_LEN, OUTPUT_SIZE)
    max_err = float(np.max(np.abs(probs64 - ref)))
    assert max_err < 2e-2, f"mismatch vs reference: {max_err}"

    print("KERNEL_OK")
</pallas_src>

<mosaic_0001>
module attributes {stable_mosaic.version = 11 : i64} {
  func.func @kernel(%arg0: i32, %arg1: memref<32x4xf32, #tpu.memory_space<vmem>>, %arg2: memref<128x128xbf16, #tpu.memory_space<vmem>>, %arg3: memref<8x128xf32, #tpu.memory_space<vmem>>, %arg4: memref<32x128xf32, #tpu.memory_space<vmem>>, %arg5: memref<32x24xf32, #tpu.memory_space<vmem>>) attributes {dimension_semantics = [#tpu.dimension_semantics<arbitrary>], iteration_bounds = array<i64: 1>, scalar_prefetch = 0 : i64, scratch_operands = 1 : i64, tpu.core_type = #tpu.core_type<tc>, window_params = [{pipeline_mode = #tpu.pipeline_mode<synchronous>, transform_indices = @transform_0, window_bounds = array<i64: 32, 4>}, {pipeline_mode = #tpu.pipeline_mode<synchronous>, transform_indices = @transform_1, window_bounds = array<i64: 128, 128>}, {pipeline_mode = #tpu.pipeline_mode<synchronous>, transform_indices = @transform_2, window_bounds = array<i64: 8, 128>}, {pipeline_mode = #tpu.pipeline_mode<synchronous>, transform_indices = @transform_3, window_bounds = array<i64: 32, 128>}]} {
    %c0 = arith.constant 0 : index
    %c0_0 = arith.constant 0 : index
    %0 = vector.load %arg1[%c0, %c0_0] : memref<32x4xf32, #tpu.memory_space<vmem>>, vector<32x4xf32>
    %cst = arith.constant 0.000000e+00 : f32
    %1 = vector.broadcast %cst : f32 to vector<2x12xf32>
    %c0_1 = arith.constant 0 : index
    %c0_2 = arith.constant 0 : index
    %2 = vector.load %arg5[%c0_1, %c0_2] : memref<32x24xf32, #tpu.memory_space<vmem>>, vector<2x12xf32>
    tpu.vector_store %arg5[%c0_1, %c0_2], %1 {strides = array<i32>} : memref<32x24xf32, #tpu.memory_space<vmem>>, vector<2x12xf32>,
    %3 = vector.extract_strided_slice %0 {offsets = [0, 0], sizes = [14, 4], strides = [1, 1]} : vector<32x4xf32> to vector<14x4xf32>
    %c2 = arith.constant 2 : index
    %c0_3 = arith.constant 0 : index
    %4 = vector.load %arg5[%c2, %c0_3] : memref<32x24xf32, #tpu.memory_space<vmem>>, vector<14x4xf32>
    tpu.vector_store %arg5[%c2, %c0_3], %3 {strides = array<i32>} : memref<32x24xf32, #tpu.memory_space<vmem>>, vector<14x4xf32>,
    %5 = vector.extract_strided_slice %0 {offsets = [0, 0], sizes = [15, 4], strides = [1, 1]} : vector<32x4xf32> to vector<15x4xf32>
    %c1 = arith.constant 1 : index
    %c4 = arith.constant 4 : index
    %6 = vector.load %arg5[%c1, %c4] : memref<32x24xf32, #tpu.memory_space<vmem>>, vector<15x4xf32>
    tpu.vector_store %arg5[%c1, %c4], %5 {strides = array<i32>} : memref<32x24xf32, #tpu.memory_space<vmem>>, vector<15x4xf32>,
    %7 = vector.extract_strided_slice %0 {offsets = [0, 0], sizes = [16, 4], strides = [1, 1]} : vector<32x4xf32> to vector<16x4xf32>
    %c0_4 = arith.constant 0 : index
    %c8 = arith.constant 8 : index
    %8 = vector.load %arg5[%c0_4, %c8] : memref<32x24xf32, #tpu.memory_space<vmem>>, vector<16x4xf32>
    tpu.vector_store %arg5[%c0_4, %c8], %7 {strides = array<i32>} : memref<32x24xf32, #tpu.memory_space<vmem>>, vector<16x4xf32>,
    %cst_5 = arith.constant 0.000000e+00 : f32
    %9 = vector.broadcast %cst_5 : f32 to vector<2x12xf32>
    %c16 = arith.constant 16 : index
    %c0_6 = arith.constant 0 : index
    %10 = vector.load %arg5[%c16, %c0_6] : memref<32x24xf32, #tpu.memory_space<vmem>>, vector<2x12xf32>
    tpu.vector_store %arg5[%c16, %c0_6], %9 {strides = array<i32>} : memref<32x24xf32, #tpu.memory_space<vmem>>, vector<2x12xf32>,
    %11 = vector.extract_strided_slice %0 {offsets = [16, 0], sizes = [14, 4], strides = [1, 1]} : vector<32x4xf32> to vector<14x4xf32>
    %c18 = arith.constant 18 : index
    %c0_7 = arith.constant 0 : index
    %12 = vector.load %arg5[%c18, %c0_7] : memref<32x24xf32, #tpu.memory_space<vmem>>, vector<14x4xf32>
    tpu.vector_store %arg5[%c18, %c0_7], %11 {strides = array<i32>} : memref<32x24xf32, #tpu.memory_space<vmem>>, vector<14x4xf32>,
    %13 = vector.extract_strided_slice %0 {offsets = [16, 0], sizes = [15, 4], strides = [1, 1]} : vector<32x4xf32> to vector<15x4xf32>
    %c17 = arith.constant 17 : index
    %c4_8 = arith.constant 4 : index
    %14 = vector.load %arg5[%c17, %c4_8] : memref<32x24xf32, #tpu.memory_space<vmem>>, vector<15x4xf32>
    tpu.vector_store %arg5[%c17, %c4_8], %13 {strides = array<i32>} : memref<32x24xf32, #tpu.memory_space<vmem>>, vector<15x4xf32>,
    %15 = vector.extract_strided_slice %0 {offsets = [16, 0], sizes = [16, 4], strides = [1, 1]} : vector<32x4xf32> to vector<16x4xf32>
    %c16_9 = arith.constant 16 : index
    %c8_10 = arith.constant 8 : index
    %16 = vector.load %arg5[%c16_9, %c8_10] : memref<32x24xf32, #tpu.memory_space<vmem>>, vector<16x4xf32>
    tpu.vector_store %arg5[%c16_9, %c8_10], %15 {strides = array<i32>} : memref<32x24xf32, #tpu.memory_space<vmem>>, vector<16x4xf32>,
    %c0_11 = arith.constant 0 : index
    %c0_12 = arith.constant 0 : index
    %17 = vector.load %arg5[%c0_11, %c0_12] : memref<32x24xf32, #tpu.memory_space<vmem>>, vector<32x12xf32>
    %18 = arith.truncf %17 : vector<32x12xf32> to vector<32x12xbf16>
    %c0_13 = arith.constant 0 : index
    %c0_14 = arith.constant 0 : index
    %19 = vector.load %arg2[%c0_13, %c0_14] : memref<128x128xbf16, #tpu.memory_space<vmem>>, vector<12x16xbf16>
    %cst_15 = arith.constant dense<0.000000e+00> : vector<32x16xf32>
    %20 = tpu.matmul %18, %19, %cst_15 {dimension_numbers = #tpu.dot_dimension_numbers<[1], [0], [0], [1], [0, 0, 1, 1], [], []>} : vector<32x12xbf16>, vector<12x16xbf16>, vector<32x16xf32> -> vector<32x16xf32>
    %c0_16 = arith.constant 0 : index
    %c0_17 = arith.constant 0 : index
    %21 = vector.load %arg3[%c0_16, %c0_17] : memref<8x128xf32, #tpu.memory_space<vmem>>, vector<1x16xf32>
    %22 = vector.broadcast %21 : vector<1x16xf32> to vector<32x16xf32>
    %23 = arith.addf %20, %22 : vector<32x16xf32>
    %24 = vector.extract_strided_slice %23 {offsets = [0, 0], sizes = [32, 8], strides = [1, 1]} : vector<32x16xf32> to vector<32x8xf32>
    %cst_18 = arith.constant 0.000000e+00 : f32
    %25 = vector.broadcast %cst_18 : f32 to vector<32x8xf32>
    %26 = arith.maximumf %24, %25 : vector<32x8xf32>
    %27 = vector.extract_strided_slice %23 {offsets = [0, 8], sizes = [32, 8], strides = [1, 1]} : vector<32x16xf32> to vector<32x8xf32>
    %cst_19 = arith.constant 0.000000e+00 : f32
    %28 = vector.broadcast %cst_19 : f32 to vector<2x24xf32>
    %c0_20 = arith.constant 0 : index
    %c0_21 = arith.constant 0 : index
    %29 = vector.load %arg5[%c0_20, %c0_21] : memref<32x24xf32, #tpu.memory_space<vmem>>, vector<2x24xf32>
    tpu.vector_store %arg5[%c0_20, %c0_21], %28 {strides = array<i32>} : memref<32x24xf32, #tpu.memory_space<vmem>>, vector<2x24xf32>,
    %30 = vector.extract_strided_slice %26 {offsets = [0, 0], sizes = [14, 8], strides = [1, 1]} : vector<32x8xf32> to vector<14x8xf32>
    %c2_22 = arith.constant 2 : index
    %c0_23 = arith.constant 0 : index
    %31 = vector.load %arg5[%c2_22, %c0_23] : memref<32x24xf32, #tpu.memory_space<vmem>>, vector<14x8xf32>
    tpu.vector_store %arg5[%c2_22, %c0_23], %30 {strides = array<i32>} : memref<32x24xf32, #tpu.memory_space<vmem>>, vector<14x8xf32>,
    %32 = vector.extract_strided_slice %26 {offsets = [0, 0], sizes = [15, 8], strides = [1, 1]} : vector<32x8xf32> to vector<15x8xf32>
    %c1_24 = arith.constant 1 : index
    %c8_25 = arith.constant 8 : index
    %33 = vector.load %arg5[%c1_24, %c8_25] : memref<32x24xf32, #tpu.memory_space<vmem>>, vector<15x8xf32>
    tpu.vector_store %arg5[%c1_24, %c8_25], %32 {strides = array<i32>} : memref<32x24xf32, #tpu.memory_space<vmem>>, vector<15x8xf32>,
    %34 = vector.extract_strided_slice %26 {offsets = [0, 0], sizes = [16, 8], strides = [1, 1]} : vector<32x8xf32> to vector<16x8xf32>
    %c0_26 = arith.constant 0 : index
    %c16_27 = arith.constant 16 : index
    %35 = vector.load %arg5[%c0_26, %c16_27] : memref<32x24xf32, #tpu.memory_space<vmem>>, vector<16x8xf32>
    tpu.vector_store %arg5[%c0_26, %c16_27], %34 {strides = array<i32>} : memref<32x24xf32, #tpu.memory_space<vmem>>, vector<16x8xf32>,
    %cst_28 = arith.constant 0.000000e+00 : f32
    %36 = vector.broadcast %cst_28 : f32 to vector<2x24xf32>
    %c16_29 = arith.constant 16 : index
    %c0_30 = arith.constant 0 : index
    %37 = vector.load %arg5[%c16_29, %c0_30] : memref<32x24xf32, #tpu.memory_space<vmem>>, vector<2x24xf32>
    tpu.vector_store %arg5[%c16_29, %c0_30], %36 {strides = array<i32>} : memref<32x24xf32, #tpu.memory_space<vmem>>, vector<2x24xf32>,
    %38 = vector.extract_strided_slice %26 {offsets = [16, 0], sizes = [14, 8], strides = [1, 1]} : vector<32x8xf32> to vector<14x8xf32>
    %c18_31 = arith.constant 18 : index
    %c0_32 = arith.constant 0 : index
    %39 = vector.load %arg5[%c18_31, %c0_32] : memref<32x24xf32, #tpu.memory_space<vmem>>, vector<14x8xf32>
    tpu.vector_store %arg5[%c18_31, %c0_32], %38 {strides = array<i32>} : memref<32x24xf32, #tpu.memory_space<vmem>>, vector<14x8xf32>,
    %40 = vector.extract_strided_slice %26 {offsets = [16, 0], sizes = [15, 8], strides = [1, 1]} : vector<32x8xf32> to vector<15x8xf32>
    %c17_33 = arith.constant 17 : index
    %c8_34 = arith.constant 8 : index
    %41 = vector.load %arg5[%c17_33, %c8_34] : memref<32x24xf32, #tpu.memory_space<vmem>>, vector<15x8xf32>
    tpu.vector_store %arg5[%c17_33, %c8_34], %40 {strides = array<i32>} : memref<32x24xf32, #tpu.memory_space<vmem>>, vector<15x8xf32>,
    %42 = vector.extract_strided_slice %26 {offsets = [16, 0], sizes = [16, 8], strides = [1, 1]} : vector<32x8xf32> to vector<16x8xf32>
    %c16_35 = arith.constant 16 : index
    %c16_36 = arith.constant 16 : index
    %43 = vector.load %arg5[%c16_35, %c16_36] : memref<32x24xf32, #tpu.memory_space<vmem>>, vector<16x8xf32>
    tpu.vector_store %arg5[%c16_35, %c16_36], %42 {strides = array<i32>} : memref<32x24xf32, #tpu.memory_space<vmem>>, vector<16x8xf32>,
    %c0_37 = arith.constant 0 : index
    %c0_38 = arith.constant 0 : index
    %44 = vector.load %arg5[%c0_37, %c0_38] : memref<32x24xf32, #tpu.memory_space<vmem>>, vector<32x24xf32>
    %45 = arith.truncf %44 : vector<32x24xf32> to vector<32x24xbf16>
    %c16_39 = arith.constant 16 : index
    %c0_40 = arith.constant 0 : index
    %46 = vector.load %arg2[%c16_39, %c0_40] : memref<128x128xbf16, #tpu.memory_space<vmem>>, vector<24x8xbf16>
    %cst_41 = arith.constant dense<0.000000e+00> : vector<32x8xf32>
    %47 = tpu.matmul %45, %46, %cst_41 {dimension_numbers = #tpu.dot_dimension_numbers<[1], [0], [0], [1], [0, 0, 1, 1], [], []>} : vector<32x24xbf16>, vector<24x8xbf16>, vector<32x8xf32> -> vector<32x8xf32>
    %c1_42 = arith.constant 1 : index
    %c0_43 = arith.constant 0 : index
    %48 = vector.load %arg3[%c1_42, %c0_43] : memref<8x128xf32, #tpu.memory_space<vmem>>, vector<1x8xf32>
    %49 = vector.broadcast %48 : vector<1x8xf32> to vector<32x8xf32>
    %50 = arith.addf %47, %49 : vector<32x8xf32>
    %cst_44 = arith.constant 0.000000e+00 : f32
    %51 = vector.broadcast %cst_44 : f32 to vector<32x8xf32>
    %52 = arith.maximumf %50, %51 : vector<32x8xf32>
    %53 = arith.addf %52, %27 : vector<32x8xf32>
    %cst_45 = arith.constant 0.000000e+00 : f32
    %54 = vector.broadcast %cst_45 : f32 to vector<32x8xf32>
    %55 = arith.maximumf %53, %54 : vector<32x8xf32>
    %cst_46 = arith.constant 0.000000e+00 : f32
    %56 = vector.broadcast %cst_46 : f32 to vector<4x24xf32>
    %c0_47 = arith.constant 0 : index
    %c0_48 = arith.constant 0 : index
    %57 = vector.load %arg5[%c0_47, %c0_48] : memref<32x24xf32, #tpu.memory_space<vmem>>, vector<4x24xf32>
    tpu.vector_store %arg5[%c0_47, %c0_48], %56 {strides = array<i32>} : memref<32x24xf32, #tpu.memory_space<vmem>>, vector<4x24xf32>,
    %58 = vector.extract_strided_slice %55 {offsets = [0, 0], sizes = [12, 8], strides = [1, 1]} : vector<32x8xf32> to vector<12x8xf32>
    %c4_49 = arith.constant 4 : index
    %c0_50 = arith.constant 0 : index
    %59 = vector.load %arg5[%c4_49, %c0_50] : memref<32x24xf32, #tpu.memory_space<vmem>>, vector<12x8xf32>
    tpu.vector_store %arg5[%c4_49, %c0_50], %58 {strides = array<i32>} : memref<32x24xf32, #tpu.memory_space<vmem>>, vector<12x8xf32>,
    %60 = vector.extract_strided_slice %55 {offsets = [0, 0], sizes = [14, 8], strides = [1, 1]} : vector<32x8xf32> to vector<14x8xf32>
    %c2_51 = arith.constant 2 : index
    %c8_52 = arith.constant 8 : index
    %61 = vector.load %arg5[%c2_51, %c8_52] : memref<32x24xf32, #tpu.memory_space<vmem>>, vector<14x8xf32>
    tpu.vector_store %arg5[%c2_51, %c8_52], %60 {strides = array<i32>} : memref<32x24xf32, #tpu.memory_space<vmem>>, vector<14x8xf32>,
    %62 = vector.extract_strided_slice %55 {offsets = [0, 0], sizes = [16, 8], strides = [1, 1]} : vector<32x8xf32> to vector<16x8xf32>
    %c0_53 = arith.constant 0 : index
    %c16_54 = arith.constant 16 : index
    %63 = vector.load %arg5[%c0_53, %c16_54] : memref<32x24xf32, #tpu.memory_space<vmem>>, vector<16x8xf32>
    tpu.vector_store %arg5[%c0_53, %c16_54], %62 {strides = array<i32>} : memref<32x24xf32, #tpu.memory_space<vmem>>, vector<16x8xf32>,
    %cst_55 = arith.constant 0.000000e+00 : f32
    %64 = vector.broadcast %cst_55 : f32 to vector<4x24xf32>
    %c16_56 = arith.constant 16 : index
    %c0_57 = arith.constant 0 : index
    %65 = vector.load %arg5[%c16_56, %c0_57] : memref<32x24xf32, #tpu.memory_space<vmem>>, vector<4x24xf32>
    tpu.vector_store %arg5[%c16_56, %c0_57], %64 {strides = array<i32>} : memref<32x24xf32, #tpu.memory_space<vmem>>, vector<4x24xf32>,
    %66 = vector.extract_strided_slice %55 {offsets = [16, 0], sizes = [12, 8], strides = [1, 1]} : vector<32x8xf32> to vector<12x8xf32>
    %c20 = arith.constant 20 : index
    %c0_58 = arith.constant 0 : index
    %67 = vector.load %arg5[%c20, %c0_58] : memref<32x24xf32, #tpu.memory_space<vmem>>, vector<12x8xf32>
    tpu.vector_store %arg5[%c20, %c0_58], %66 {strides = array<i32>} : memref<32x24xf32, #tpu.memory_space<vmem>>, vector<12x8xf32>,
    %68 = vector.extract_strided_slice %55 {offsets = [16, 0], sizes = [14, 8], strides = [1, 1]} : vector<32x8xf32> to vector<14x8xf32>
    %c18_59 = arith.constant 18 : index
    %c8_60 = arith.constant 8 : index
    %69 = vector.load %arg5[%c18_59, %c8_60] : memref<32x24xf32, #tpu.memory_space<vmem>>, vector<14x8xf32>
    tpu.vector_store %arg5[%c18_59, %c8_60], %68 {strides = array<i32>} : memref<32x24xf32, #tpu.memory_space<vmem>>, vector<14x8xf32>,
    %70 = vector.extract_strided_slice %55 {offsets = [16, 0], sizes = [16, 8], strides = [1, 1]} : vector<32x8xf32> to vector<16x8xf32>
    %c16_61 = arith.constant 16 : index
    %c16_62 = arith.constant 16 : index
    %71 = vector.load %arg5[%c16_61, %c16_62] : memref<32x24xf32, #tpu.memory_space<vmem>>, vector<16x8xf32>
    tpu.vector_store %arg5[%c16_61, %c16_62], %70 {strides = array<i32>} : memref<32x24xf32, #tpu.memory_space<vmem>>, vector<16x8xf32>,
    %c0_63 = arith.constant 0 : index
    %c0_64 = arith.constant 0 : index
    %72 = vector.load %arg5[%c0_63, %c0_64] : memref<32x24xf32, #tpu.memory_space<vmem>>, vector<32x24xf32>
    %73 = arith.truncf %72 : vector<32x24xf32> to vector<32x24xbf16>
    %c48 = arith.constant 48 : index
    %c0_65 = arith.constant 0 : index
    %74 = vector.load %arg2[%c48, %c0_65] : memref<128x128xbf16, #tpu.memory_space<vmem>>, vector<24x8xbf16>
    %cst_66 = arith.constant dense<0.000000e+00> : vector<32x8xf32>
    %75 = tpu.matmul %73, %74, %cst_66 {dimension_numbers = #tpu.dot_dimension_numbers<[1], [0], [0], [1], [0, 0, 1, 1], [], []>} : vector<32x24xbf16>, vector<24x8xbf16>, vector<32x8xf32> -> vector<32x8xf32>
    %c2_67 = arith.constant 2 : index
    %c0_68 = arith.constant 0 : index
    %76 = vector.load %arg3[%c2_67, %c0_68] : memref<8x128xf32, #tpu.memory_space<vmem>>, vector<1x8xf32>
    %77 = vector.broadcast %76 : vector<1x8xf32> to vector<32x8xf32>
    %78 = arith.addf %75, %77 : vector<32x8xf32>
    %cst_69 = arith.constant 0.000000e+00 : f32
    %79 = vector.broadcast %cst_69 : f32 to vector<32x8xf32>
    %80 = arith.maximumf %78, %79 : vector<32x8xf32>
    %cst_70 = arith.constant 0.000000e+00 : f32
    %81 = vector.broadcast %cst_70 : f32 to vector<4x24xf32>
    %c0_71 = arith.constant 0 : index
    %c0_72 = arith.constant 0 : index
    %82 = vector.load %arg5[%c0_71, %c0_72] : memref<32x24xf32, #tpu.memory_space<vmem>>, vector<4x24xf32>
    tpu.vector_store %arg5[%c0_71, %c0_72], %81 {strides = array<i32>} : memref<32x24xf32, #tpu.memory_space<vmem>>, vector<4x24xf32>,
    %83 = vector.extract_strided_slice %80 {offsets = [0, 0], sizes = [12, 8], strides = [1, 1]} : vector<32x8xf32> to vector<12x8xf32>
    %c4_73 = arith.constant 4 : index
    %c0_74 = arith.constant 0 : index
    %84 = vector.load %arg5[%c4_73, %c0_74] : memref<32x24xf32, #tpu.memory_space<vmem>>, vector<12x8xf32>
    tpu.vector_store %arg5[%c4_73, %c0_74], %83 {strides = array<i32>} : memref<32x24xf32, #tpu.memory_space<vmem>>, vector<12x8xf32>,
    %85 = vector.extract_strided_slice %80 {offsets = [0, 0], sizes = [14, 8], strides = [1, 1]} : vector<32x8xf32> to vector<14x8xf32>
    %c2_75 = arith.constant 2 : index
    %c8_76 = arith.constant 8 : index
    %86 = vector.load %arg5[%c2_75, %c8_76] : memref<32x24xf32, #tpu.memory_space<vmem>>, vector<14x8xf32>
    tpu.vector_store %arg5[%c2_75, %c8_76], %85 {strides = array<i32>} : memref<32x24xf32, #tpu.memory_space<vmem>>, vector<14x8xf32>,
    %87 = vector.extract_strided_slice %80 {offsets = [0, 0], sizes = [16, 8], strides = [1, 1]} : vector<32x8xf32> to vector<16x8xf32>
    %c0_77 = arith.constant 0 : index
    %c16_78 = arith.constant 16 : index
    %88 = vector.load %arg5[%c0_77, %c16_78] : memref<32x24xf32, #tpu.memory_space<vmem>>, vector<16x8xf32>
    tpu.vector_store %arg5[%c0_77, %c16_78], %87 {strides = array<i32>} : memref<32x24xf32, #tpu.memory_space<vmem>>, vector<16x8xf32>,
    %cst_79 = arith.constant 0.000000e+00 : f32
    %89 = vector.broadcast %cst_79 : f32 to vector<4x24xf32>
    %c16_80 = arith.constant 16 : index
    %c0_81 = arith.constant 0 : index
    %90 = vector.load %arg5[%c16_80, %c0_81] : memref<32x24xf32, #tpu.memory_space<vmem>>, vector<4x24xf32>
    tpu.vector_store %arg5[%c16_80, %c0_81], %89 {strides = array<i32>} : memref<32x24xf32, #tpu.memory_space<vmem>>, vector<4x24xf32>,
    %91 = vector.extract_strided_slice %80 {offsets = [16, 0], sizes = [12, 8], strides = [1, 1]} : vector<32x8xf32> to vector<12x8xf32>
    %c20_82 = arith.constant 20 : index
    %c0_83 = arith.constant 0 : index
    %92 = vector.load %arg5[%c20_82, %c0_83] : memref<32x24xf32, #tpu.memory_space<vmem>>, vector<12x8xf32>
    tpu.vector_store %arg5[%c20_82, %c0_83], %91 {strides = array<i32>} : memref<32x24xf32, #tpu.memory_space<vmem>>, vector<12x8xf32>,
    %93 = vector.extract_strided_slice %80 {offsets = [16, 0], sizes = [14, 8], strides = [1, 1]} : vector<32x8xf32> to vector<14x8xf32>
    %c18_84 = arith.constant 18 : index
    %c8_85 = arith.constant 8 : index
    %94 = vector.load %arg5[%c18_84, %c8_85] : memref<32x24xf32, #tpu.memory_space<vmem>>, vector<14x8xf32>
    tpu.vector_store %arg5[%c18_84, %c8_85], %93 {strides = array<i32>} : memref<32x24xf32, #tpu.memory_space<vmem>>, vector<14x8xf32>,
    %95 = vector.extract_strided_slice %80 {offsets = [16, 0], sizes = [16, 8], strides = [1, 1]} : vector<32x8xf32> to vector<16x8xf32>
    %c16_86 = arith.constant 16 : index
    %c16_87 = arith.constant 16 : index
    %96 = vector.load %arg5[%c16_86, %c16_87] : memref<32x24xf32, #tpu.memory_space<vmem>>, vector<16x8xf32>
    tpu.vector_store %arg5[%c16_86, %c16_87], %95 {strides = array<i32>} : memref<32x24xf32, #tpu.memory_space<vmem>>, vector<16x8xf32>,
    %c0_88 = arith.constant 0 : index
    %c0_89 = arith.constant 0 : index
    %97 = vector.load %arg5[%c0_88, %c0_89] : memref<32x24xf32, #tpu.memory_space<vmem>>, vector<32x24xf32>
    %98 = arith.truncf %97 : vector<32x24xf32> to vector<32x24xbf16>
    %c80 = arith.constant 80 : index
    %c0_90 = arith.constant 0 : index
    %99 = vector.load %arg2[%c80, %c0_90] : memref<128x128xbf16, #tpu.memory_space<vmem>>, vector<24x8xbf16>
    %cst_91 = arith.constant dense<0.000000e+00> : vector<32x8xf32>
    %100 = tpu.matmul %98, %99, %cst_91 {dimension_numbers = #tpu.dot_dimension_numbers<[1], [0], [0], [1], [0, 0, 1, 1], [], []>} : vector<32x24xbf16>, vector<24x8xbf16>, vector<32x8xf32> -> vector<32x8xf32>
    %c3 = arith.constant 3 : index
    %c0_92 = arith.constant 0 : index
    %101 = vector.load %arg3[%c3, %c0_92] : memref<8x128xf32, #tpu.memory_space<vmem>>, vector<1x8xf32>
    %102 = vector.broadcast %101 : vector<1x8xf32> to vector<32x8xf32>
    %103 = arith.addf %100, %102 : vector<32x8xf32>
    %cst_93 = arith.constant 0.000000e+00 : f32
    %104 = vector.broadcast %cst_93 : f32 to vector<32x8xf32>
    %105 = arith.maximumf %103, %104 : vector<32x8xf32>
    %106 = arith.addf %105, %55 : vector<32x8xf32>
    %cst_94 = arith.constant 0.000000e+00 : f32
    %107 = vector.broadcast %cst_94 : f32 to vector<32x8xf32>
    %108 = arith.maximumf %106, %107 : vector<32x8xf32>
    %c112 = arith.constant 112 : index
    %c0_95 = arith.constant 0 : index
    %109 = vector.load %arg2[%c112, %c0_95] : memref<128x128xbf16, #tpu.memory_space<vmem>>, vector<8x128xbf16>
    %110 = arith.truncf %108 : vector<32x8xf32> to vector<32x8xbf16>
    %cst_96 = arith.constant dense<0.000000e+00> : vector<32x128xf32>
    %111 = tpu.matmul %110, %109, %cst_96 {dimension_numbers = #tpu.dot_dimension_numbers<[1], [0], [0], [1], [0, 0, 1, 1], [], []>} : vector<32x8xbf16>, vector<8x128xbf16>, vector<32x128xf32> -> vector<32x128xf32>
    %c4_97 = arith.constant 4 : index
    %c0_98 = arith.constant 0 : index
    %112 = vector.load %arg3[%c4_97, %c0_98] : memref<8x128xf32, #tpu.memory_space<vmem>>, vector<1x128xf32>
    %113 = vector.broadcast %112 : vector<1x128xf32> to vector<32x128xf32>
    %114 = arith.addf %111, %113 : vector<32x128xf32>
    %cst_99 = arith.constant 5.000000e-01 : f32
    %115 = vector.broadcast %cst_99 : f32 to vector<32x128xf32>
    %116 = arith.mulf %115, %114 : vector<32x128xf32>
    %117 = math.tanh %116 : vector<32x128xf32>
    %cst_100 = arith.constant 1.000000e+00 : f32
    %118 = vector.broadcast %cst_100 : f32 to vector<32x128xf32>
    %119 = arith.addf %117, %118 : vector<32x128xf32>
    %cst_101 = arith.constant 5.000000e-01 : f32
    %120 = vector.broadcast %cst_101 : f32 to vector<32x128xf32>
    %121 = arith.mulf %120, %119 : vector<32x128xf32>
    %c0_102 = arith.constant 0 : index
    %c0_103 = arith.constant 0 : index
    %122 = vector.load %arg4[%c0_102, %c0_103] : memref<32x128xf32, #tpu.memory_space<vmem>>, vector<32x128xf32>
    tpu.vector_store %arg4[%c0_102, %c0_103], %121 {strides = array<i32>} : memref<32x128xf32, #tpu.memory_space<vmem>>, vector<32x128xf32>,
    return
  }
  func.func @transform_0(%arg0: i32) -> (i32, i32) {
    %c0_i32 = arith.constant 0 : i32
    %c0_i32_0 = arith.constant 0 : i32
    %c0_i32_1 = arith.constant 0 : i32
    return %c0_i32, %c0_i32_0 : i32, i32
  }
  func.func @transform_1(%arg0: i32) -> (i32, i32) {
    %c0_i32 = arith.constant 0 : i32
    %c0_i32_0 = arith.constant 0 : i32
    %c0_i32_1 = arith.constant 0 : i32
    return %c0_i32, %c0_i32_0 : i32, i32
  }
  func.func @transform_2(%arg0: i32) -> (i32, i32) {
    %c0_i32 = arith.constant 0 : i32
    %c0_i32_0 = arith.constant 0 : i32
    %c0_i32_1 = arith.constant 0 : i32
    return %c0_i32, %c0_i32_0 : i32, i32
  }
  func.func @transform_3(%arg0: i32) -> (i32, i32) {
    %c0_i32 = arith.constant 0 : i32
    %c0_i32_0 = arith.constant 0 : i32
    %c0_i32_1 = arith.constant 0 : i32
    return %c0_i32, %c0_i32_0 : i32, i32
  }
}

</mosaic_0001>

<bundles_post_ra>
// kernel: tpu_custom_call.1
= control target key start
LH: loop header
LB: loop body
LE: loop exit
PB: predicated region body
PF: predicated region fallthrough
CT: control target
= control target key end

     0   :  { %8 = vsyncpa [#allocation4], 0  ;;  %s1041_s0 = inlined_call_operand.vmem [shape: f32[32,4], index: 0, kind: input, shape index: {}]   ;;  %s1042_s1 = inlined_call_operand.hbm [shape: bf16[128,128], index: 1, kind: input, shape index: {}]   ;;  %s1043_s2 = inlined_call_operand.vmem [shape: f32[8,128], index: 2, kind: input, shape index: {}]   ;;  %s1044_s3 = inlined_call_operand.hbm [shape: f32[32,128], index: 3, kind: output, shape index: {}]  }
   0x1   :  { %9 = vsyncpa [#allocation5], 0  ;;  %s844_s12 = smov [#allocation3]   ;;  %s796_s16 = scalar_lea.hbm %s1042_s1, 1024 }
   0x2   :  { %s17_s13 = sshll.u32 %s844_s12, 4  ;;  %p797_p0 = scmp.ne.s32.totalorder %s1042_s1, %s796_s16  ;;  %s18_s13 = int_to_ptr.vmem [resolvable:$true] %s17_s13 }
   0x3   :  { %p800_p1 = scmp.lt.u32.totalorder %s796_s16, %s1042_s1 }
   0x5   :  { %p802_p2 = pnand %p800_p1, %p797_p0 }
   0x7   :  { %805 = shalt.err (!%p802_p2)
}
   0x8   :  { %s806_s21 = scalar_lea.vmem %s18_s13, 1024  ;;  %p811_p4 = scmp.lt.s32.totalorder %s18_s13, %s18_s13 }
   0x9   :  { %p807_p3 = scmp.ne.s32.totalorder %s18_s13, %s806_s21  ;;  %p812_p5 = scmp.lt.s32.totalorder %s806_s21, %s806_s21 }
   0xb   :  { %p813_p6 = por %p812_p5, %p811_p4 }
   0xd   :  { %p814_p7 = pnand %p813_p6, %p807_p3 }
   0xf   :  { %817 = shalt.err (!%p814_p7)
}
  0x10   :  { %s845_s22 = smov 64   ;;  %s846_s23 = smov 4  }
  0x11   :  { %23 = dma.hbm_to_vmem [thread:$0]  %s1042_s1, 1024, %s18_s13, [#allocation4], %s845_s22, %s845_s22, %s846_s23  }
  0x12   :  { %840 = dma.done.wait [#allocation4], 1024  }
  0x13   :  { %841 = vsyncadd [#allocation4], 4294966272  ;;  %vm34_vm0 = vcmask 91136   ;;  %v847_v0 = vmov 0.0   ;;  %vm36_vm1 = vcmask 31744   ;;  %vm38_vm2 = vcmask 29696  }
  0x14   :  { %35 = vst.msk [vmem:[#allocation2] sm:$0x3] %vm34_vm0, %v847_v0  ;;  %61 = vst.msk [vmem:[#allocation2 + $0x10] sm:$0x3] %vm34_vm0, %v847_v0  ;;  %v30_v1 = vld [vmem:[%s1041_s0] sm:$0xff]  ;;  %v31_v2 = vld [vmem:[%s1041_s0 + $0x8] sm:$0xff] }
  0x15   :  { %v33_v3 = vld [vmem:[%s1041_s0 + $0x18] sm:$0xff]  ;;  %s848_s4 = smov 8   ;;  %37 = vst.msk [vmem:[#allocation2 + $0x2] sm:$0xff] %vm36_vm1, %v30_v1  ;;  %42 = vrot.lane.b32.xlu0 %v30_v1, %s846_s23  ;;  %v32_v4 = vld [vmem:[%s1041_s0 + $0x10] sm:$0xff]  ;;  %v781_v5 = vld [vmem:[#allocation3] sm:$0x3f]  }
  0x16   :  { %52 = vrot.lane.b32.xlu1 %v30_v1, %s848_s4  ;;  %39 = vst.msk [vmem:[#allocation2 + $0xa] sm:$0x3f] %vm38_vm2, %v31_v2  ;;  %63 = vst.msk [vmem:[#allocation2 + $0x1a] sm:$0x3f] %vm38_vm2, %v33_v3  ;;  %vm107_vm3 = vcmask 1045504   ;;  %vm48_vm4 = vcmask 64544  }
  0x17   :  { %62 = vst.msk [vmem:[#allocation2 + $0x12] sm:$0xff] %vm36_vm1, %v32_v4  ;;  %767 = vmatprep.subr.msk.bf16.mxu0 %vm107_vm3, %v781_v5  ;;  %v109_v6 = vsel %vm107_vm3, %v781_v5, 0  ;;  %vm58_vm5 = vcmask 97344   ;;  %vm50_vm6 = vcmask 63520   ;;  %vm164_vm7 = vcmask 189440   ;;  %v782_v34 = vld [vmem:[#allocation3 + $0x8] sm:$0xff]  }
  0x18   :  { %732 = vmatpush3.bf16.msra.mxu0 %v109_v6  ;;  %vm100_vm8 = vcmask 97280   ;;  %v691_v21 = vld [vmem:[%s1043_s2] ss:$0 sm:$0xff]  ;;  %vm166_vm9 = vcmask 64512   ;;  %vm168_vm10 = vcmask 62464   ;;  %737 = vmatprep.subr.bf16.mxu1 %v782_v34  ;;  %vm242_vm11 = vcmask 1043456  }
  0x19   :  { %44 = vrot.lane.b32.xlu0 %v31_v2, %s846_s23  ;;  %738 = vmatpush3.bf16.msra.mxu1 %v782_v34  ;;  %v783_v35 = vld [vmem:[#allocation3 + $0x10] ss:$0 sps:$4 sm:$0xff]   ;;  %s849_s8 = smov 16   ;;  %s850_s9 = smov 120   ;;  %vm178_vm12 = vcmask 130112   ;;  %vm180_vm13 = vcmask 129088  }
  0x1a   :  { %54 = vrot.lane.b32.xlu1 %v31_v2, %s848_s4  ;;  %768 = vmatprep.subr.msk.bf16.mxu1 %vm242_vm11, %v783_v35  ;;  %v244_v36 = vsel %vm242_vm11, %v783_v35, 0  ;;  %vm188_vm14 = vcmask 195712   ;;  %vm323_vm15 = vcmask 191488   ;;  %vm235_vm0 = vcmask 195584   ;;  %v695_v52 = vld [vmem:[%s1043_s2 + $0x1] ss:$0 sm:$0xff] }
  0x1b   :  { %vm326_vm1 = vcmask 60416   ;;  %vm337_vm2 = vcmask 128064  }
  0x1d   :  { %66 = vrot.lane.b32.xlu0 %v32_v4, %s846_s23  ;;  %740 = vmatpush3.bf16.msra.mxu1 %v244_v36 }
  0x1e   :  { %68 = vrot.lane.b32.xlu1 %v33_v3, %s846_s23 }
  0x21   :  { %74 = vrot.lane.b32.xlu0 %v32_v4, %s848_s4 }
  0x22   :  { %76 = vrot.lane.b32.xlu1 %v33_v3, %s848_s4 }
  0x87   :  { %v43_v8 = vpop.permute.xlu0 %42 }
  0x88   :  { %v53_v7 = vpop.permute.xlu1 %52  ;;  %49 = vst.msk [vmem:[#allocation2 + $0x1] sm:$0xff] %vm48_vm4, %v43_v8 }
  0x89   :  { %59 = vst.msk [vmem:[#allocation2] sm:$0xff] %vm58_vm5, %v53_v7 }
  0x8b   :  { %v45_v10 = vpop.permute.xlu0 %44 }
  0x8c   :  { %v55_v9 = vpop.permute.xlu1 %54  ;;  %51 = vst.msk [vmem:[#allocation2 + $0x9] sm:$0x7f] %vm50_vm6, %v45_v10 }
  0x8d   :  { %60 = vst.msk [vmem:[#allocation2 + $0x8] sm:$0xff] %vm58_vm5, %v55_v9 }
  0x8f   :  { %v67_v12 = vpop.permute.xlu0 %66 }
  0x90   :  { %v69_v11 = vpop.permute.xlu1 %68  ;;  %72 = vst.msk [vmem:[#allocation2 + $0x11] sm:$0xff] %vm48_vm4, %v67_v12  ;;  %v82_v13 = vld [vmem:[#allocation2] sm:$0xff] }
  0x91   :  { %73 = vst.msk [vmem:[#allocation2 + $0x19] sm:$0x7f] %vm50_vm6, %v69_v11 }
  0x92   :  { %165 = vst.msk [vmem:[#allocation2] sm:$0x3] %vm164_vm7, %v847_v0 }
  0x93   :  { %v75_v15 = vpop.permute.xlu0 %74 }
  0x94   :  { %v77_v14 = vpop.permute.xlu1 %76  ;;  %80 = vst.msk [vmem:[#allocation2 + $0x10] sm:$0xff] %vm58_vm5, %v75_v15  ;;  %v83_v16 = vld [vmem:[#allocation2 + $0x8] sm:$0xff] }
  0x95   :  { %81 = vst.msk [vmem:[#allocation2 + $0x18] sm:$0xff] %vm58_vm5, %v77_v14  ;;  %v86_v17 = vpack.c.bf16 %v83_v16, %v82_v13  ;;  %v784_v13 = vld [vmem:[#allocation3 + $0x18] sm:$0xff]   ;;  %v785_v14 = vld [vmem:[#allocation3 + $0x20] ss:$0 sps:$4 sm:$0xff]  }
  0x96   :  { %745 = vmatprep.subr.bf16.mxu0 %v784_v13  ;;  %v398_v15 = vsel %vm242_vm11, %v785_v14, 0 }
  0x97   :  { %733 = vmatprep.mubr.msk.bf16.mxu0 %vm100_vm8, %v86_v17 }
  0x9b   :  { %v84_v18 = vld [vmem:[#allocation2 + $0x10] sm:$0xff] }
  0x9c   :  { %v85_v19 = vld [vmem:[#allocation2 + $0x18] sm:$0xff]  ;;  %191 = vst.msk [vmem:[#allocation2 + $0x10] sm:$0x3] %vm164_vm7, %v847_v0 }
  0x9d   :  { %v87_v20 = vpack.c.bf16 %v85_v19, %v84_v18 }
  0x9f   :  { %734 = vmatmul.mubr.msk.bf16.vlgmr.msra.gmra.mrb[0].mxu0 %vm100_vm8, %v87_v20 }
  0xa0   :  { %746 = vmatpush3.bf16.msra.mxu0 %v784_v13 }
  0xa1   :  { %769 = vmatprep.subr.msk.bf16.mxu0 %vm242_vm11, %v785_v14 }
  0xa4   :  { %748 = vmatpush3.bf16.msra.mxu0 %v398_v15 }
 0x172   :  { %v735_v22 = vpop.f32.mrb[0].mxu0 }
 0x173   :  { %v154_v23 = vadd.f32 %v735_v22, %v691_v21  ;;  %v145_v24 = vpop.f32.mrb[1].mxu0 }
 0x174   :  { %v146_v25 = vadd.f32 %v691_v21, %v145_v24  ;;  %v736_v26 = vpop.f32.mrb[2].mxu0 }
 0x175   :  { %v162_v27 = vmax.f32 %v154_v23, 0.0  ;;  %v157_v28 = vadd.f32 %v736_v26, %v691_v21  ;;  %v148_v29 = vpop.f32.mrb[3].mxu0 }
 0x176   :  { %v160_v30 = vmax.f32 %v146_v25, 0.0  ;;  %v149_v31 = vadd.f32 %v691_v21, %v148_v29 }
 0x177   :  { %v163_v32 = vmax.f32 %v157_v28, 0.0  ;;  %196 = vrot.lane.b32.xlu0 %v162_v27, %s848_s4  ;;  %192 = vst.msk [vmem:[#allocation2 + $0x12] sm:$0xff] %vm166_vm9, %v162_v27 }
 0x178   :  { %v161_v33 = vmax.f32 %v149_v31, 0.0  ;;  %167 = vst.msk [vmem:[#allocation2 + $0x2] sm:$0xff] %vm166_vm9, %v160_v30 }
 0x179   :  { %193 = vst.msk [vmem:[#allocation2 + $0x1a] sm:$0x3f] %vm168_vm10, %v163_v32  ;;  %198 = vrot.lane.b32.xlu1 %v163_v32, %s848_s4 }
 0x17a   :  { %169 = vst.msk [vmem:[#allocation2 + $0xa] sm:$0x3f] %vm168_vm10, %v161_v33 }
 0x17b   :  { %172 = vrot.lane.b32.xlu0 %v160_v30, %s848_s4 }
 0x17d   :  { %174 = vrot.lane.b32.xlu1 %v161_v33, %s848_s4 }
 0x17f   :  { %182 = vrot.lane.b32.xlu0 %v160_v30, %s849_s8  ;;  %v700_v30 = vld [vmem:[%s1043_s2 + $0x2] ss:$0 sm:$0xff] }
 0x181   :  { %184 = vrot.lane.b32.xlu1 %v161_v33, %s849_s8 }
 0x183   :  { %204 = vrot.lane.b32.xlu0 %v162_v27, %s849_s8 }
 0x185   :  { %206 = vrot.lane.b32.xlu1 %v163_v32, %s849_s8 }
 0x187   :  { %303 = vrot.lane.b32.xlu0 %v146_v25, %s850_s9 }
 0x189   :  { %305 = vrot.lane.b32.xlu1 %v149_v31, %s850_s9 }
 0x18b   :  { %307 = vrot.lane.b32.xlu0 %v154_v23, %s850_s9 }
 0x18d   :  { %309 = vrot.lane.b32.xlu1 %v157_v28, %s850_s9 }
 0x1e9   :  { %v197_v37 = vpop.permute.xlu0 %196 }
 0x1ea   :  { %202 = vst.msk [vmem:[#allocation2 + $0x11] sm:$0xff] %vm178_vm12, %v197_v37 }
 0x1eb   :  { %v199_v38 = vpop.permute.xlu1 %198 }
 0x1ec   :  { %203 = vst.msk [vmem:[#allocation2 + $0x19] sm:$0x7f] %vm180_vm13, %v199_v38 }
 0x1ed   :  { %v173_v39 = vpop.permute.xlu0 %172 }
 0x1ee   :  { %179 = vst.msk [vmem:[#allocation2 + $0x1] sm:$0xff] %vm178_vm12, %v173_v39 }
 0x1ef   :  { %v175_v40 = vpop.permute.xlu1 %174 }
 0x1f0   :  { %181 = vst.msk [vmem:[#allocation2 + $0x9] sm:$0x7f] %vm180_vm13, %v175_v40 }
 0x1f1   :  { %v183_v41 = vpop.permute.xlu0 %182 }
 0x1f2   :  { %189 = vst.msk [vmem:[#allocation2] sm:$0xff] %vm188_vm14, %v183_v41 }
 0x1f3   :  { %v185_v42 = vpop.permute.xlu1 %184 }
 0x1f4   :  { %190 = vst.msk [vmem:[#allocation2 + $0x8] sm:$0xff] %vm188_vm14, %v185_v42  ;;  %v786_v42 = vld [vmem:[#allocation3 + $0x28] sm:$0xff]  }
 0x1f5   :  { %v205_v43 = vpop.permute.xlu0 %204  ;;  %753 = vmatprep.subr.bf16.mxu1 %v786_v42 }
 0x1f6   :  { %210 = vst.msk [vmem:[#allocation2 + $0x10] sm:$0xff] %vm188_vm14, %v205_v43  ;;  %v787_v43 = vld [vmem:[#allocation3 + $0x30] ss:$0 sps:$4 sm:$0xff]  }
 0x1f7   :  { %v207_v44 = vpop.permute.xlu1 %206 }
 0x1f8   :  { %211 = vst.msk [vmem:[#allocation2 + $0x18] sm:$0xff] %vm188_vm14, %v207_v44  ;;  %v525_v44 = vsel %vm242_vm11, %v787_v43, 0 }
 0x1f9   :  { %v212_v45 = vld [vmem:[#allocation2] sm:$0xff]  ;;  %v304_v51 = vpop.permute.xlu0 %303 }
 0x1fa   :  { %324 = vst.msk [vmem:[#allocation2] sm:$0xf] %vm323_vm15, %v847_v0 }
 0x1fb   :  { %v213_v46 = vld [vmem:[#allocation2 + $0x8] sm:$0xff]  ;;  %v306_v53 = vpop.permute.xlu1 %305 }
 0x1fc   :  { %v216_v47 = vpack.c.bf16 %v213_v46, %v212_v45 }
 0x1fd   :  { %v214_v48 = vld [vmem:[#allocation2 + $0x10] sm:$0xff]  ;;  %v308_v62 = vpop.permute.xlu0 %307 }
 0x1fe   :  { %741 = vmatprep.mubr.msk.bf16.mxu1 %vm235_vm0, %v216_v47  ;;  %347 = vst.msk [vmem:[#allocation2 + $0x10] sm:$0xf] %vm323_vm15, %v847_v0 }
 0x1ff   :  { %v215_v49 = vld [vmem:[#allocation2 + $0x18] sm:$0xff]  ;;  %v310_v4 = vpop.permute.xlu1 %309 }
 0x200   :  { %v217_v50 = vpack.c.bf16 %v215_v49, %v214_v48 }
 0x202   :  { %742 = vmatmul.mubr.msk.bf16.vlgmr.msra.gmra.mrb[0].mxu1 %vm235_vm0, %v217_v50 }
 0x203   :  { %754 = vmatpush3.bf16.msra.mxu1 %v786_v42 }
 0x204   :  { %770 = vmatprep.subr.msk.bf16.mxu1 %vm242_vm11, %v787_v43 }
 0x207   :  { %756 = vmatpush3.bf16.msra.mxu1 %v525_v44 }
 0x2d5   :  { %v743_v54 = vpop.f32.mrb[0].mxu1 }
 0x2d6   :  { %v289_v55 = vadd.f32 %v743_v54, %v695_v52  ;;  %v280_v56 = vpop.f32.mrb[1].mxu1 }
 0x2d7   :  { %v281_v57 = vadd.f32 %v695_v52, %v280_v56  ;;  %v744_v58 = vpop.f32.mrb[2].mxu1 }
 0x2d8   :  { %v297_v59 = vmax.f32 %v289_v55, 0.0  ;;  %v292_v60 = vadd.f32 %v744_v58, %v695_v52  ;;  %v283_v61 = vpop.f32.mrb[3].mxu1 }
 0x2d9   :  { %v295_v63 = vmax.f32 %v281_v57, 0.0  ;;  %v284_v1 = vadd.f32 %v695_v52, %v283_v61  ;;  %v705_v61 = vld [vmem:[%s1043_s2 + $0x3] ss:$0 sm:$0xff] }
 0x2da   :  { %v317_v2 = vadd.f32 %v308_v62, %v297_v59  ;;  %v298_v3 = vmax.f32 %v292_v60, 0.0  ;;  %v588_v59 = vld [vmem:[#allocation3 + $0x38] sm:$0xf] }
 0x2db   :  { %v315_v5 = vadd.f32 %v304_v51, %v295_v63  ;;  %v296_v6 = vmax.f32 %v284_v1, 0.0  ;;  %771 = vmatprep.subr.msk.bf16.mxu0 %vm242_vm11, %v588_v59  ;;  %v603_v60 = vsel %vm242_vm11, %v588_v59, 0 }
 0x2dc   :  { %v939_v7 = vmax.f32 %v317_v2, 0.0  ;;  %v318_v8 = vadd.f32 %v310_v4, %v298_v3 }
 0x2dd   :  { %v941_v9 = vmax.f32 %v315_v5, 0.0  ;;  %v316_v10 = vadd.f32 %v306_v53, %v296_v6 }
 0x2de   :  { %348 = vst.msk [vmem:[#allocation2 + $0x14] sm:$0xff] %vm166_vm9, %v939_v7  ;;  %v945_v11 = vmax.f32 %v318_v8, 0.0  ;;  %352 = vrot.lane.b32.xlu0 %v939_v7, %s848_s4 }
 0x2df   :  { %325 = vst.msk [vmem:[#allocation2 + $0x4] sm:$0xff] %vm166_vm9, %v941_v9  ;;  %v951_v12 = vmax.f32 %v316_v10, 0.0 }
 0x2e0   :  { %349 = vst.msk [vmem:[#allocation2 + $0x1c] sm:$0xf] %vm326_vm1, %v945_v11  ;;  %354 = vrot.lane.b32.xlu1 %v945_v11, %s848_s4 }
 0x2e1   :  { %327 = vst.msk [vmem:[#allocation2 + $0xc] sm:$0xf] %vm326_vm1, %v951_v12 }
 0x2e2   :  { %330 = vrot.lane.b32.xlu0 %v941_v9, %s848_s4 }
 0x2e4   :  { %332 = vrot.lane.b32.xlu1 %v951_v12, %s848_s4 }
 0x2e6   :  { %339 = vrot.lane.b32.xlu0 %v941_v9, %s849_s8 }
 0x2e8   :  { %341 = vrot.lane.b32.xlu1 %v951_v12, %s849_s8 }
 0x2ea   :  { %360 = vrot.lane.b32.xlu0 %v939_v7, %s849_s8 }
 0x2ec   :  { %362 = vrot.lane.b32.xlu1 %v945_v11, %s849_s8 }
 0x350   :  { %v353_v16 = vpop.permute.xlu0 %352 }
 0x351   :  { %358 = vst.msk [vmem:[#allocation2 + $0x12] sm:$0xff] %vm178_vm12, %v353_v16 }
 0x352   :  { %v355_v17 = vpop.permute.xlu1 %354 }
 0x353   :  { %359 = vst.msk [vmem:[#allocation2 + $0x1a] sm:$0x3f] %vm337_vm2, %v355_v17 }
 0x354   :  { %v331_v18 = vpop.permute.xlu0 %330 }
 0x355   :  { %336 = vst.msk [vmem:[#allocation2 + $0x2] sm:$0xff] %vm178_vm12, %v331_v18 }
 0x356   :  { %v333_v19 = vpop.permute.xlu1 %332 }
 0x357   :  { %338 = vst.msk [vmem:[#allocation2 + $0xa] sm:$0x3f] %vm337_vm2, %v333_v19 }
 0x358   :  { %v340_v20 = vpop.permute.xlu0 %339 }
 0x359   :  { %345 = vst.msk [vmem:[#allocation2] sm:$0xff] %vm188_vm14, %v340_v20 }
 0x35a   :  { %v342_v21 = vpop.permute.xlu1 %341 }
 0x35b   :  { %346 = vst.msk [vmem:[#allocation2 + $0x8] sm:$0xff] %vm188_vm14, %v342_v21 }
 0x35c   :  { %v361_v22 = vpop.permute.xlu0 %360 }
 0x35d   :  { %366 = vst.msk [vmem:[#allocation2 + $0x10] sm:$0xff] %vm188_vm14, %v361_v22 }
 0x35e   :  { %v363_v23 = vpop.permute.xlu1 %362 }
 0x35f   :  { %367 = vst.msk [vmem:[#allocation2 + $0x18] sm:$0xff] %vm188_vm14, %v363_v23 }
 0x360   :  { %v368_v24 = vld [vmem:[#allocation2] sm:$0xff] }
 0x361   :  { %453 = vst.msk [vmem:[#allocation2] sm:$0xf] %vm323_vm15, %v847_v0 }
 0x362   :  { %v369_v25 = vld [vmem:[#allocation2 + $0x8] sm:$0xff] }
 0x363   :  { %v372_v26 = vpack.c.bf16 %v369_v25, %v368_v24 }
 0x364   :  { %v370_v27 = vld [vmem:[#allocation2 + $0x10] sm:$0xff] }
 0x365   :  { %474 = vst.msk [vmem:[#allocation2 + $0x10] sm:$0xf] %vm323_vm15, %v847_v0  ;;  %749 = vmatprep.mubr.msk.bf16.mxu0 %vm235_vm0, %v372_v26 }
 0x366   :  { %v371_v28 = vld [vmem:[#allocation2 + $0x18] sm:$0xff] }
 0x367   :  { %v373_v29 = vpack.c.bf16 %v371_v28, %v370_v27 }
 0x369   :  { %750 = vmatmul.mubr.msk.bf16.vlgmr.msra.gmra.mrb[4].mxu0 %vm235_vm0, %v373_v29 }
 0x36a   :  { %762 = vmatpush3.bf16.msra.mxu0 %v603_v60 }
 0x43c   :  { %v751_v31 = vpop.f32.mrb[4].mxu0 }
 0x43d   :  { %v443_v32 = vadd.f32 %v751_v31, %v700_v30  ;;  %v434_v33 = vpop.f32.mrb[5].mxu0 }
 0x43e   :  { %v435_v34 = vadd.f32 %v700_v30, %v434_v33  ;;  %v752_v35 = vpop.f32.mrb[6].mxu0 }
 0x43f   :  { %v451_v36 = vmax.f32 %v443_v32, 0.0  ;;  %v446_v37 = vadd.f32 %v752_v35, %v700_v30  ;;  %v437_v38 = vpop.f32.mrb[7].mxu0 }
 0x440   :  { %v449_v39 = vmax.f32 %v435_v34, 0.0  ;;  %v438_v0 = vadd.f32 %v700_v30, %v437_v38 }
 0x441   :  { %475 = vst.msk [vmem:[#allocation2 + $0x14] sm:$0xff] %vm166_vm9, %v451_v36  ;;  %v452_v40 = vmax.f32 %v446_v37, 0.0  ;;  %479 = vrot.lane.b32.xlu0 %v451_v36, %s848_s4 }
 0x442   :  { %454 = vst.msk [vmem:[#allocation2 + $0x4] sm:$0xff] %vm166_vm9, %v449_v39  ;;  %v450_v41 = vmax.f32 %v438_v0, 0.0 }
 0x443   :  { %476 = vst.msk [vmem:[#allocation2 + $0x1c] sm:$0xf] %vm326_vm1, %v452_v40  ;;  %481 = vrot.lane.b32.xlu1 %v452_v40, %s848_s4 }
 0x444   :  { %455 = vst.msk [vmem:[#allocation2 + $0xc] sm:$0xf] %vm326_vm1, %v450_v41 }
 0x445   :  { %458 = vrot.lane.b32.xlu0 %v449_v39, %s848_s4 }
 0x447   :  { %460 = vrot.lane.b32.xlu1 %v450_v41, %s848_s4 }
 0x449   :  { %466 = vrot.lane.b32.xlu0 %v449_v39, %s849_s8 }
 0x44b   :  { %468 = vrot.lane.b32.xlu1 %v450_v41, %s849_s8 }
 0x44d   :  { %487 = vrot.lane.b32.xlu0 %v451_v36, %s849_s8 }
 0x44f   :  { %489 = vrot.lane.b32.xlu1 %v452_v40, %s849_s8 }
 0x4b3   :  { %v480_v45 = vpop.permute.xlu0 %479 }
 0x4b4   :  { %485 = vst.msk [vmem:[#allocation2 + $0x12] sm:$0xff] %vm178_vm12, %v480_v45 }
 0x4b5   :  { %v482_v46 = vpop.permute.xlu1 %481 }
 0x4b6   :  { %486 = vst.msk [vmem:[#allocation2 + $0x1a] sm:$0x3f] %vm337_vm2, %v482_v46 }
 0x4b7   :  { %v459_v47 = vpop.permute.xlu0 %458 }
 0x4b8   :  { %464 = vst.msk [vmem:[#allocation2 + $0x2] sm:$0xff] %vm178_vm12, %v459_v47 }
 0x4b9   :  { %v461_v48 = vpop.permute.xlu1 %460 }
 0x4ba   :  { %465 = vst.msk [vmem:[#allocation2 + $0xa] sm:$0x3f] %vm337_vm2, %v461_v48 }
 0x4bb   :  { %v467_v49 = vpop.permute.xlu0 %466 }
 0x4bc   :  { %472 = vst.msk [vmem:[#allocation2] sm:$0xff] %vm188_vm14, %v467_v49 }
 0x4bd   :  { %v469_v50 = vpop.permute.xlu1 %468 }
 0x4be   :  { %473 = vst.msk [vmem:[#allocation2 + $0x8] sm:$0xff] %vm188_vm14, %v469_v50 }
 0x4bf   :  { %v488_v51 = vpop.permute.xlu0 %487 }
 0x4c0   :  { %493 = vst.msk [vmem:[#allocation2 + $0x10] sm:$0xff] %vm188_vm14, %v488_v51 }
 0x4c1   :  { %v490_v52 = vpop.permute.xlu1 %489 }
 0x4c2   :  { %494 = vst.msk [vmem:[#allocation2 + $0x18] sm:$0xff] %vm188_vm14, %v490_v52 }
 0x4c3   :  { %v495_v53 = vld [vmem:[#allocation2] sm:$0xff] }
 0x4c5   :  { %v496_v54 = vld [vmem:[#allocation2 + $0x8] sm:$0xff] }
 0x4c6   :  { %v499_v55 = vpack.c.bf16 %v496_v54, %v495_v53 }
 0x4c7   :  { %v497_v56 = vld [vmem:[#allocation2 + $0x10] sm:$0xff] }
 0x4c8   :  { %757 = vmatprep.mubr.msk.bf16.mxu1 %vm235_vm0, %v499_v55 }
 0x4c9   :  { %v498_v57 = vld [vmem:[#allocation2 + $0x18] sm:$0xff] }
 0x4ca   :  { %v500_v58 = vpack.c.bf16 %v498_v57, %v497_v56 }
 0x4cc   :  { %758 = vmatmul.mubr.msk.bf16.vlgmr.msra.gmra.mrb[4].mxu1 %vm235_vm0, %v500_v58 }
 0x59f   :  { %v759_v62 = vpop.f32.mrb[4].mxu1 }
 0x5a0   :  { %v570_v63 = vadd.f32 %v759_v62, %v705_v61  ;;  %v561_v1 = vpop.f32.mrb[5].mxu1 }
 0x5a1   :  { %v562_v2 = vadd.f32 %v705_v61, %v561_v1  ;;  %v760_v3 = vpop.f32.mrb[6].mxu1 }
 0x5a2   :  { %v578_v4 = vmax.f32 %v570_v63, 0.0  ;;  %v573_v5 = vadd.f32 %v760_v3, %v705_v61  ;;  %v564_v6 = vpop.f32.mrb[7].mxu1 }
 0x5a3   :  { %v576_v8 = vmax.f32 %v562_v2, 0.0  ;;  %v565_v10 = vadd.f32 %v705_v61, %v564_v6 }
 0x5a4   :  { %v582_v13 = vadd.f32 %v578_v4, %v939_v7  ;;  %v579_v14 = vmax.f32 %v573_v5, 0.0  ;;  %v710_v7 = vld [vmem:[%s1043_s2 + $0x4] ss:$0 sm:$0xff]  ;;  %s851_s2 = smov [#allocation6]  }
 0x5a5   :  { %v580_v15 = vadd.f32 %v576_v8, %v941_v9  ;;  %v577_v16 = vmax.f32 %v565_v10, 0.0  ;;  %s679_s18 = sshll.u32 %s851_s2, 4  ;;  %s680_s18 = int_to_ptr.vmem [resolvable:$true] %s679_s18 }
 0x5a6   :  { %v583_v17 = vadd.f32 %v579_v14, %v945_v11  ;;  %v586_v19 = vmax.f32 %v582_v13, 0.0  ;;  %s818_s19 = scalar_lea.vmem %s680_s18, 512  ;;  %p823_p9 = scmp.lt.s32.totalorder %s680_s18, %s680_s18 }
 0x5a7   :  { %v581_v18 = vadd.f32 %v577_v16, %v951_v12  ;;  %v584_v21 = vmax.f32 %v580_v15, 0.0  ;;  %p819_p8 = scmp.ne.s32.totalorder %s680_s18, %s818_s19  ;;  %p824_p10 = scmp.lt.s32.totalorder %s818_s19, %s818_s19 }
 0x5a8   :  { %v587_v20 = vmax.f32 %v583_v17, 0.0 }
 0x5a9   :  { %v585_v22 = vmax.f32 %v581_v18, 0.0  ;;  %p825_p11 = por %p824_p10, %p823_p9 }
 0x5aa   :  { %v590_v23 = vpack.c.bf16 %v587_v20, %v586_v19 }
 0x5ab   :  { %v589_v24 = vpack.c.bf16 %v585_v22, %v584_v21  ;;  %p826_p12 = pnand %p825_p11, %p819_p8 }
 0x5ad   :  { %763 = vmatprep.mubr.msk.bf16.mxu0 %vm166_vm9, %v589_v24 }
 0x5ae   :  { %764 = vmatmul.mubr.msk.bf16.vlgmr.msra.gmra.mrb[8].mxu0 %vm166_vm9, %v590_v23 }
 0x681   :  { %v765_v9 = vpop.f32.mrb[8].mxu0 }
 0x682   :  { %v648_v25 = vadd.f32 %v765_v9, %v710_v7  ;;  %v639_v26 = vpop.f32.mrb[9].mxu0 }
 0x683   :  { %v640_v11 = vadd.f32 %v710_v7, %v639_v26  ;;  %v766_v27 = vpop.f32.mrb[10].mxu0 }
 0x684   :  { %v656_v12 = vmul.f32 0.5, %v648_v25  ;;  %v651_v28 = vadd.f32 %v766_v27, %v710_v7  ;;  %v642_v29 = vpop.f32.mrb[11].mxu0 }
 0x685   :  { %v654_v30 = vmul.f32 0.5, %v640_v11  ;;  %v643_v31 = vadd.f32 %v710_v7, %v642_v29 }
 0x686   :  { %788 = vtanh.f32 %v656_v12  ;;  %v657_v32 = vmul.f32 0.5, %v651_v28 }
 0x687   :  { %790 = vtanh.f32 %v654_v30  ;;  %v655_v33 = vmul.f32 0.5, %v643_v31 }
 0x688   :  { %792 = vtanh.f32 %v657_v32 }
 0x689   :  { %794 = vtanh.f32 %v655_v33 }
 0x690   :  { %v789_v34 = vpop.eup %788 }
 0x691   :  { %v791_v35 = vpop.eup %790  ;;  %v664_v36 = vadd.f32 1.0, %v789_v34 }
 0x692   :  { %v793_v37 = vpop.eup %792  ;;  %v662_v38 = vadd.f32 1.0, %v791_v35 }
 0x693   :  { %v795_v39 = vpop.eup %794  ;;  %v668_v0 = vmul.f32 0.5, %v664_v36  ;;  %v665_v40 = vadd.f32 1.0, %v793_v37 }
 0x694   :  { %v666_v41 = vmul.f32 0.5, %v662_v38  ;;  %v663_v42 = vadd.f32 1.0, %v795_v39 }
 0x695   :  { %672 = vst [vmem:[#allocation6 + $0x10] sm:$0xff] %v668_v0  ;;  %v669_v43 = vmul.f32 0.5, %v665_v40 }
 0x696   :  { %670 = vst [vmem:[#allocation6] sm:$0xff] %v666_v41  ;;  %v667_v44 = vmul.f32 0.5, %v663_v42 }
 0x697   :  { %673 = vst [vmem:[#allocation6 + $0x18] sm:$0xff] %v669_v43 }
 0x698   :  { %671 = vst [vmem:[#allocation6 + $0x8] sm:$0xff] %v667_v44 }
 0x699   :  { %829 = shalt.err (!%p826_p12)
}
 0x69a   :  { %s830_s22 = scalar_lea.hbm %s1044_s3, 512 }
 0x69b   :  { %p831_p13 = scmp.ne.s32.totalorder %s1044_s3, %s830_s22  ;;  %p834_p0 = scmp.lt.u32.totalorder %s830_s22, %s1044_s3 }
 0x69d   :  { %p836_p1 = pnand %p834_p0, %p831_p13 }
 0x69f   :  { %839 = shalt.err (!%p836_p1)
}
 0x6a0   :  { %s852_s27 = smov 128  }
 0x6a1   :  { %685 = dma.vmem_to_hbm [thread:$0]  %s680_s18, 512, %s1044_s3, [#allocation5], %s852_s27, %s852_s27, %s848_s4  }
 0x6a2   :  { %842 = dma.done.wait [#allocation5], 512  }
 0x6a3   :  { %843 = vsyncadd [#allocation5], 4294966784 }
 0x6a4   :  { %689 = vsyncpa [#allocation4], 1 }
 0x6a5   :  { %690 = vsyncpa [#allocation5], 1 }

</bundles_post_ra>
